<compile_context>
chip_gen: v6e
topology: v6e:2x2x1
jax: 0.10.0
libtpu: 0.0.40
codegen_flags: <defaults>
</compile_context>

<pallas_src>
import functools

import jax
import jax.numpy as jnp
from jax import lax
from jax.experimental import pallas as pl
from jax.experimental.pallas import tpu as pltpu


# ------------------------------ tile helpers ------------------------------- #

def _pick_tile(dim, preferred, align):
    """Largest t <= preferred with t % align == 0 and dim % t == 0, else full dim."""
    if dim <= preferred or dim % align != 0:
        return dim
    t = (preferred // align) * align
    while t >= align:
        if dim % t == 0:
            return t
        t -= align
    return dim


def _pick_head_group(num_heads, head_dim):
    """Heads per grid step: lane-dense (>=128 wide) output tile if possible,
    while respecting the (8, 128) block constraint on the sublane dim."""
    if num_heads * head_dim <= 128:
        return num_heads
    for hsub in range(8, num_heads, 8):            # multiples of 8 that divide H
        if num_heads % hsub == 0 and hsub * head_dim >= 128:
            return hsub
    return num_heads                               # full H always satisfies the constraint


# ------------------------------ linear kernel ------------------------------ #

def _linear_kernel(x_ref, w_ref, b_ref, o_ref, acc_ref):
    @pl.when(pl.program_id(2) == 0)
    def _():
        acc_ref[...] = jnp.zeros_like(acc_ref)

    acc_ref[...] += jnp.dot(x_ref[...], w_ref[...],
                            preferred_element_type=jnp.float32)

    @pl.when(pl.program_id(2) == pl.num_programs(2) - 1)
    def _():
        o_ref[...] = (acc_ref[...] + b_ref[...].astype(jnp.float32)).astype(o_ref.dtype)


def linear(x, w, b, *, tm=256, tn=256, tk=512):
    """x: (M, K), w: (K, Nout), b: (Nout,) -> (M, Nout).  Tiled, pipelined matmul."""
    M, K = x.shape
    Nout = w.shape[1]
    tm = _pick_tile(M, tm, 8)
    tn = _pick_tile(Nout, tn, 128)
    tk = _pick_tile(K, tk, 128)
    b2 = b.reshape(1, Nout)
    grid = (M // tm, Nout // tn, K // tk)
    return pl.pallas_call(
        _linear_kernel,
        out_shape=jax.ShapeDtypeStruct((M, Nout), x.dtype),
        grid_spec=pltpu.PrefetchScalarGridSpec(
            num_scalar_prefetch=0,
            grid=grid,
            in_specs=[
                pl.BlockSpec((tm, tk), lambda i, j, k: (i, k)),
                pl.BlockSpec((tk, tn), lambda i, j, k: (k, j)),
                pl.BlockSpec((1, tn), lambda i, j, k: (0, j)),
            ],
            out_specs=pl.BlockSpec((tm, tn), lambda i, j, k: (i, j)),
            scratch_shapes=[pltpu.VMEM((tm, tn), jnp.float32)],
        ),
        compiler_params=pltpu.CompilerParams(
            dimension_semantics=("parallel", "parallel", "arbitrary")),
        cost_estimate=pl.CostEstimate(
            flops=2 * M * K * Nout,
            transcendentals=0,
            bytes_accessed=(M * K + K * Nout + M * Nout) * x.dtype.itemsize),
    )(x, w, b2)


# ----------------------------- attention kernel ----------------------------- #

def _attention_kernel(q_ref, k_ref, v_ref, o_ref, *, hsub, head_dim):
    # q/k/v refs: (N, hsub, D) slices of the (B, N, 3, H, D) qkv tensor.
    # o ref:      (N, hsub*D) slice of the (B, N, C) output.
    q_all = q_ref[...]
    k_all = k_ref[...]
    v_all = v_ref[...]
    for h in range(hsub):                      # static unroll over heads in the group
        q = q_all[:, h, :]                     # (N, D) -- softmax scale pre-folded into q weights
        k = k_all[:, h, :]
        v = v_all[:, h, :]
        # q @ k^T without materializing a transpose: contract the last dims on the MXU.
        s = lax.dot_general(q, k, (((1,), (1,)), ((), ())),
                            preferred_element_type=jnp.float32)      # (N, N)
        m = jnp.max(s, axis=-1, keepdims=True)
        p = jnp.exp(s - m)
        p = p * pl.reciprocal(jnp.sum(p, axis=-1, keepdims=True), approx=True)
        o = jnp.dot(p.astype(v.dtype), v, preferred_element_type=jnp.float32)
        o_ref[:, h * head_dim:(h + 1) * head_dim] = o.astype(o_ref.dtype)


def attention(qkv):
    """qkv: (B, N, 3, H, D) -> (B, N, H*D).  Heads grouped per grid step; output is
    written directly in (B, N, C) layout (no transposes between Pallas calls)."""
    B, N, _, H, D = qkv.shape
    C = H * D
    hsub = _pick_head_group(H, D)
    n_groups = H // hsub
    kern = functools.partial(_attention_kernel, hsub=hsub, head_dim=D)

    def qkv_spec(idx):
        return pl.BlockSpec(
            (None, N, None, hsub, D),
            lambda b, g, idx=idx: (b, 0, idx, g, 0))

    itemsize = qkv.dtype.itemsize
    return pl.pallas_call(
        kern,
        out_shape=jax.ShapeDtypeStruct((B, N, C), qkv.dtype),
        grid_spec=pltpu.PrefetchScalarGridSpec(
            num_scalar_prefetch=0,
            grid=(B, n_groups),
            in_specs=[qkv_spec(0), qkv_spec(1), qkv_spec(2)],
            out_specs=pl.BlockSpec((None, N, hsub * D), lambda b, g: (b, 0, g)),
        ),
        compiler_params=pltpu.CompilerParams(
            dimension_semantics=("parallel", "parallel")),
        cost_estimate=pl.CostEstimate(
            flops=4 * B * H * N * N * D,
            transcendentals=B * H * N * N,
            bytes_accessed=(qkv.size + B * N * C) * itemsize),
    )(qkv, qkv, qkv)


# ------------------------------ module wrapper ------------------------------ #

class SelfAttentionPallas:
    def __init__(self, dim, num_heads, qkv_bias=False, key=None, dtype=jnp.float32):
        self.dim = dim
        self.num_heads = num_heads
        self.head_dim = dim // num_heads
        self.scale = self.head_dim ** (-0.5)
        key = jax.random.PRNGKey(0) if key is None else key
        k1, k2, k3, k4 = jax.random.split(key, 4)
        # Deterministic synthetic parameters (shapes match nn.Linear in the module).
        # Note: stored as (in, out) so forward is x @ w + b.  bf16 params/activations
        # are supported (MXU accumulates in f32 via preferred_element_type).
        self.w_qkv = (jax.random.normal(k1, (dim, dim * 3), jnp.float32) * 0.02).astype(dtype)
        self.b_qkv = ((jax.random.normal(k2, (dim * 3,), jnp.float32) * 0.02).astype(dtype)
                      if qkv_bias else jnp.zeros((dim * 3,), dtype))
        self.w_prj = (jax.random.normal(k3, (dim, dim), jnp.float32) * 0.02).astype(dtype)
        self.b_prj = (jax.random.normal(k4, (dim,), jnp.float32) * 0.02).astype(dtype)
        # Fold the softmax scale into the q-columns of the qkv projection at init
        # (free at runtime): (q*scale) @ k^T == (q @ k^T) * scale.
        col_scale = jnp.concatenate(
            [jnp.full((dim,), self.scale, dtype), jnp.ones((2 * dim,), dtype)])
        self.w_qkv_eff = self.w_qkv * col_scale[None, :]
        self.b_qkv_eff = self.b_qkv * col_scale

    def __call__(self, x, attn_mask=None):
        if attn_mask is not None:
            raise NotImplementedError("attn_mask not supported")  # TODO(synk): attn_mask
        B, N, C = x.shape
        H, D = self.num_heads, self.head_dim

        # qkv projection (tiled Pallas matmul); scale already folded into q columns.
        qkv = linear(x.reshape(B * N, C), self.w_qkv_eff, self.b_qkv_eff)   # (B*N, 3C)
        qkv = qkv.reshape(B, N, 3, H, D)   # contiguous reshape: free, no transpose

        # attention: reads q/k/v straight out of qkv, writes (B, N, C) directly.
        o = attention(qkv)                                                  # (B, N, C)

        # output projection (tiled Pallas matmul)
        out = linear(o.reshape(B * N, C), self.w_prj, self.b_prj)
        return out.reshape(B, N, C)


# ---------------------- pure-JAX reference (correctness) -------------------- #

def reference(x, mod: SelfAttentionPallas):
    B, N, C = x.shape
    H, D = mod.num_heads, mod.head_dim
    qkv = x @ mod.w_qkv + mod.b_qkv
    qkv = qkv.reshape(B, N, 3, H, D).transpose(2, 0, 3, 1, 4)
    q, k, v = qkv[0], qkv[1], qkv[2]
    attn = jnp.einsum("bhnd,bhmd->bhnm", q, k) * mod.scale
    attn = jax.nn.softmax(attn, axis=-1)
    o = jnp.einsum("bhnm,bhmd->bhnd", attn, v)
    o = o.transpose(0, 2, 1, 3).reshape(B, N, C)
    return o @ mod.w_prj + mod.b_prj


if __name__ == "__main__":
    B, N, C, H = 2, 8, 32, 4
    key = jax.random.PRNGKey(0)
    kx, kp = jax.random.split(key)
    x = jax.random.normal(kx, (B, N, C), jnp.float32)

    mod = SelfAttentionPallas(dim=C, num_heads=H, qkv_bias=False, key=kp)
    out = mod(x)
    out = jax.block_until_ready(out)

    ref = reference(x, mod)
    assert out.shape == (B, N, C)
    # Tolerance allows for the approximate (EUP) reciprocal in the softmax denominator.
    assert jnp.allclose(out, ref, atol=1e-3, rtol=1e-2), "mismatch vs reference"
    print("KERNEL_OK")
</pallas_src>

<mosaic_0001>
module attributes {stable_mosaic.version = 11 : i64} {
  func.func @_linear_kernel(%arg0: i32, %arg1: i32, %arg2: i32, %arg3: memref<16x32xf32, #tpu.memory_space<vmem>>, %arg4: memref<32x96xf32, #tpu.memory_space<vmem>>, %arg5: memref<1x96xf32, #tpu.memory_space<vmem>>, %arg6: memref<16x96xf32, #tpu.memory_space<vmem>>, %arg7: memref<16x96xf32, #tpu.memory_space<vmem>>) attributes {dimension_semantics = [#tpu.dimension_semantics<parallel>, #tpu.dimension_semantics<parallel>, #tpu.dimension_semantics<arbitrary>], iteration_bounds = array<i64: 1, 1, 1>, scalar_prefetch = 0 : i64, scratch_operands = 1 : i64, tpu.core_type = #tpu.core_type<tc>, window_params = [{transform_indices = @transform_0, window_bounds = array<i64: 16, 32>}, {transform_indices = @transform_1, window_bounds = array<i64: 32, 96>}, {transform_indices = @transform_2, window_bounds = array<i64: 1, 96>}, {transform_indices = @transform_3, window_bounds = array<i64: 16, 96>}]} {
    %c0_i32 = arith.constant 0 : i32
    %0 = arith.cmpi eq, %arg2, %c0_i32 : i32
    %1 = arith.extui %0 : i1 to i32
    %c0_i32_0 = arith.constant 0 : i32
    %2 = arith.cmpi ne, %1, %c0_i32_0 : i32
    scf.if %2 {
      %cst_10 = arith.constant 0.000000e+00 : f32
      %12 = vector.broadcast %cst_10 : f32 to vector<16x96xf32>
      %c0_11 = arith.constant 0 : index
      %c0_12 = arith.constant 0 : index
      %13 = vector.load %arg7[%c0_11, %c0_12] : memref<16x96xf32, #tpu.memory_space<vmem>>, vector<16x96xf32>
      tpu.vector_store %arg7[%c0_11, %c0_12], %12 {strides = array<i32>} : memref<16x96xf32, #tpu.memory_space<vmem>>, vector<16x96xf32>,
    } else {
    }
    %c0 = arith.constant 0 : index
    %c0_1 = arith.constant 0 : index
    %3 = vector.load %arg7[%c0, %c0_1] : memref<16x96xf32, #tpu.memory_space<vmem>>, vector<16x96xf32>
    %c0_2 = arith.constant 0 : index
    %c0_3 = arith.constant 0 : index
    %4 = vector.load %arg3[%c0_2, %c0_3] : memref<16x32xf32, #tpu.memory_space<vmem>>, vector<16x32xf32>
    %c0_4 = arith.constant 0 : index
    %c0_5 = arith.constant 0 : index
    %5 = vector.load %arg4[%c0_4, %c0_5] : memref<32x96xf32, #tpu.memory_space<vmem>>, vector<32x96xf32>
    %cst = arith.constant dense<0.000000e+00> : vector<16x96xf32>
    %6 = tpu.matmul %4, %5, %cst {dimension_numbers = #tpu.dot_dimension_numbers<[1], [0], [0], [1], [0, 0, 1, 1], [], []>} : vector<16x32xf32>, vector<32x96xf32>, vector<16x96xf32> -> vector<16x96xf32>
    %7 = arith.addf %3, %6 : vector<16x96xf32>
    %c0_6 = arith.constant 0 : index
    %c0_7 = arith.constant 0 : index
    %8 = vector.load %arg7[%c0_6, %c0_7] : memref<16x96xf32, #tpu.memory_space<vmem>>, vector<16x96xf32>
    tpu.vector_store %arg7[%c0_6, %c0_7], %7 {strides = array<i32>} : memref<16x96xf32, #tpu.memory_space<vmem>>, vector<16x96xf32>,
    %c0_i32_8 = arith.constant 0 : i32
    %9 = arith.cmpi eq, %arg2, %c0_i32_8 : i32
    %10 = arith.extui %9 : i1 to i32
    %c0_i32_9 = arith.constant 0 : i32
    %11 = arith.cmpi ne, %10, %c0_i32_9 : i32
    scf.if %11 {
      %c0_10 = arith.constant 0 : index
      %c0_11 = arith.constant 0 : index
      %12 = vector.load %arg7[%c0_10, %c0_11] : memref<16x96xf32, #tpu.memory_space<vmem>>, vector<16x96xf32>
      %c0_12 = arith.constant 0 : index
      %c0_13 = arith.constant 0 : index
      %13 = vector.load %arg5[%c0_12, %c0_13] : memref<1x96xf32, #tpu.memory_space<vmem>>, vector<1x96xf32>
      %14 = vector.broadcast %13 : vector<1x96xf32> to vector<16x96xf32>
      %15 = arith.addf %12, %14 : vector<16x96xf32>
      %c0_14 = arith.constant 0 : index
      %c0_15 = arith.constant 0 : index
      %16 = vector.load %arg6[%c0_14, %c0_15] : memref<16x96xf32, #tpu.memory_space<vmem>>, vector<16x96xf32>
      tpu.vector_store %arg6[%c0_14, %c0_15], %15 {strides = array<i32>} : memref<16x96xf32, #tpu.memory_space<vmem>>, vector<16x96xf32>,
    } else {
    }
    return
  }
  func.func @transform_0(%arg0: i32, %arg1: i32, %arg2: i32) -> (i32, i32) {
    %c0_i32 = arith.constant 0 : i32
    return %arg0, %arg2 : i32, i32
  }
  func.func @transform_1(%arg0: i32, %arg1: i32, %arg2: i32) -> (i32, i32) {
    %c0_i32 = arith.constant 0 : i32
    return %arg2, %arg1 : i32, i32
  }
  func.func @transform_2(%arg0: i32, %arg1: i32, %arg2: i32) -> (i32, i32) {
    %c0_i32 = arith.constant 0 : i32
    %c0_i32_0 = arith.constant 0 : i32
    return %c0_i32, %arg1 : i32, i32
  }
  func.func @transform_3(%arg0: i32, %arg1: i32, %arg2: i32) -> (i32, i32) {
    %c0_i32 = arith.constant 0 : i32
    return %arg0, %arg1 : i32, i32
  }
}

</mosaic_0001>

<bundles_post_ra>
// kernel: tpu_custom_call.1
= control target key start
LH: loop header
LB: loop body
LE: loop exit
PB: predicated region body
PF: predicated region fallthrough
CT: control target
= control target key end

     0   :  { %8 = vsyncpa [#allocation4], 0  ;;  %s326_s0 = inlined_call_operand.hbm [shape: f32[16,32], index: 0, kind: input, shape index: {}]   ;;  %s327_s1 = inlined_call_operand.hbm [shape: f32[32,96], index: 1, kind: input, shape index: {}]   ;;  %s328_s2 = inlined_call_operand.vmem [shape: f32[1,96], index: 2, kind: input, shape index: {}]   ;;  %s329_s3 = inlined_call_operand.hbm [shape: f32[16,96], index: 3, kind: output, shape index: {}]  }
   0x1   :  { %9 = vsyncpa [#allocation7], 0 }
   0x2   :  { %10 = vsyncpa [#allocation5], 0  ;;  %s271_s12 = smov [#allocation3]  }
   0x3   :  { %s16_s13 = sshll.u32 %s271_s12, 4  ;;  %s17_s13 = int_to_ptr.vmem [resolvable:$true] %s16_s13 }
   0x4   :  { %s213_s14 = scalar_lea.vmem %s17_s13, 256  ;;  %p218_p1 = scmp.lt.s32.totalorder %s17_s13, %s17_s13 }
   0x5   :  { %p214_p0 = scmp.ne.s32.totalorder %s17_s13, %s213_s14  ;;  %p219_p2 = scmp.lt.s32.totalorder %s213_s14, %s213_s14 }
   0x7   :  { %p220_p3 = por %p219_p2, %p218_p1 }
   0x9   :  { %p221_p4 = pnand %p220_p3, %p214_p0 }
   0xb   :  { %224 = shalt.err (!%p221_p4)
}
   0xc   :  { %s272_s15 = smov 128   ;;  %s273_s16 = smov 8  }
   0xd   :  { %22 = dma.hbm_to_vmem [thread:$0]  %s326_s0, 256, %s17_s13, [#allocation4], %s272_s15, %s272_s15, %s273_s16  }
   0xe   :  { %s274_s19 = smov [#allocation6]  }
   0xf   :  { %s28_s20 = sshll.u32 %s274_s19, 4  ;;  %s29_s20 = int_to_ptr.vmem [resolvable:$true] %s28_s20 }
  0x10   :  { %s233_s21 = scalar_lea.vmem %s29_s20, 512  ;;  %p238_p6 = scmp.lt.s32.totalorder %s29_s20, %s29_s20 }
  0x11   :  { %p234_p5 = scmp.ne.s32.totalorder %s29_s20, %s233_s21  ;;  %p239_p7 = scmp.lt.s32.totalorder %s233_s21, %s233_s21 }
  0x13   :  { %p240_p8 = por %p239_p7, %p238_p6 }
  0x15   :  { %p241_p9 = pnand %p240_p8, %p234_p5 }
  0x17   :  { %244 = shalt.err (!%p241_p9)
}
  0x18   :  { %34 = dma.hbm_to_vmem [thread:$0]  %s327_s1, 512, %s29_s20, [#allocation7], %s272_s15, %s272_s15, %s273_s16  }
  0x19   :  { %265 = dma.done.wait [#allocation4], 256  }
  0x1a   :  { %266 = vsyncadd [#allocation4], 4294967040 }
  0x1b   :  { %267 = dma.done.wait [#allocation7], 512  }
  0x1c   :  { %268 = vsyncadd [#allocation7], 4294966784  ;;  %vm47_vm0 = vcmask 785408   ;;  %v275_v0 = vmov 0.0   ;;  %vm58_vm1 = vcmask 261120   ;;  %v57_v1 = vld [vmem:[#allocation6 + $0x18] sm:$0xff] }
  0x1d   :  { %49 = vst.msk [vmem:[#allocation2 + $0x8] sm:$0xff] %vm47_vm0, %v275_v0  ;;  %48 = vst.msk [vmem:[#allocation2] sm:$0xff] %vm47_vm0, %v275_v0  ;;  %v56_v2 = vld [vmem:[#allocation6 + $0x10] sm:$0xff]  ;;  %188 = vmatprep.subr.mxu0 %v57_v1  ;;  %v55_v4 = vld [vmem:[#allocation6 + $0x8] sm:$0xff]  ;;  %s276_s24 = smov [#allocation8]  }
  0x1e   :  { %v52_v3 = vld [vmem:[#allocation3] sm:$0xff]  ;;  %189 = vmatpush3.msra.mxu0 %v57_v1  ;;  %v54_v5 = vld [vmem:[#allocation6] sm:$0xff]  ;;  %v53_v6 = vld [vmem:[#allocation3 + $0x8] sm:$0xff]  ;;  %s166_s25 = sshll.u32 %s276_s24, 4  ;;  %s167_s25 = int_to_ptr.vmem [resolvable:$true] %s166_s25 }
  0x1f   :  { %196 = vmatprep.mubr.msk.f32.mxu0 %vm58_vm1, %v52_v3  ;;  %190 = vmatprep.subr.mxu0 %v56_v2  ;;  %v181_v13 = vld [vmem:[%s328_s2] ss:$0 sm:$0xff]  ;;  %s245_s26 = scalar_lea.vmem %s167_s25, 256  ;;  %p250_p11 = scmp.lt.s32.totalorder %s167_s25, %s167_s25 }
  0x20   :  { %191 = vmatpush3.msra.mxu0 %v56_v2  ;;  %p246_p10 = scmp.ne.s32.totalorder %s167_s25, %s245_s26  ;;  %p251_p12 = scmp.lt.s32.totalorder %s245_s26, %s245_s26 }
  0x21   :  { %192 = vmatprep.subr.mxu0 %v55_v4 }
  0x22   :  { %193 = vmatpush3.msra.mxu0 %v55_v4  ;;  %p252_p13 = por %p251_p12, %p250_p11 }
  0x23   :  { %194 = vmatprep.subr.mxu0 %v54_v5 }
  0x24   :  { %195 = vmatpush3.msra.mxu0 %v54_v5  ;;  %v51_v7 = vld [vmem:[#allocation2 + $0x8] sm:$0xff]  ;;  %v50_v9 = vld [vmem:[#allocation2] sm:$0xff]  ;;  %p253_p0 = pnand %p252_p13, %p246_p10 }
  0x25   :  { %197 = vmatmul.mubr.msk.f32.vlgmr.msra.gmra.mxu0 %vm58_vm1, %v53_v6 }
  0xe5   :  { %v198_v8 = vpop.f32.mrf.mxu0 }
  0xe6   :  { %v141_v10 = vadd.f32 %v198_v8, %v51_v7 }
  0xe7   :  { %v131_v11 = vpop.f32.mrf.mxu0 }
  0xe8   :  { %144 = vst.msk [vmem:[#allocation2 + $0x8] sm:$0xff] %vm47_vm0, %v141_v10  ;;  %v140_v12 = vadd.f32 %v131_v11, %v50_v9 }
  0xea   :  { %143 = vst.msk [vmem:[#allocation2] sm:$0xff] %vm47_vm0, %v140_v12 }
  0xef   :  { %v149_v14 = vld [vmem:[#allocation2 + $0x8] sm:$0xff] }
  0xf0   :  { %v158_v15 = vadd.f32 %v181_v13, %v149_v14 }
  0xf1   :  { %v148_v16 = vld [vmem:[#allocation2] sm:$0xff] }
  0xf2   :  { %v157_v17 = vadd.f32 %v181_v13, %v148_v16  ;;  %160 = vst.msk [vmem:[#allocation8 + $0x8] sm:$0xff] %vm47_vm0, %v158_v15 }
  0xf4   :  { %159 = vst.msk [vmem:[#allocation8] sm:$0xff] %vm47_vm0, %v157_v17 }
  0xf5   :  { %256 = shalt.err (!%p253_p0)
}
  0xf6   :  { %172 = dma.vmem_to_hbm [thread:$0]  %s167_s25, 256, %s329_s3, [#allocation5], %s272_s15, %s272_s15, %s273_s16  }
  0xf7   :  { %269 = dma.done.wait [#allocation5], 256  }
  0xf8   :  { %270 = vsyncadd [#allocation5], 4294967040 }
  0xf9   :  { %176 = vsyncpa [#allocation4], 1 }
  0xfa   :  { %177 = vsyncpa [#allocation7], 1 }
  0xfb   :  { %178 = vsyncpa [#allocation5], 1 }

</bundles_post_ra>
